<compile_context>
chip_gen: v7x
topology: tpu7x:2x2x1
jax: 0.10.0
libtpu: 0.0.40
codegen_flags: <defaults>
</compile_context>

<pallas_src>
import jax
import jax.numpy as jnp
from jax.experimental import pallas as pl
from jax.experimental.pallas import tpu as pltpu

EPS = 1e-5
LANE = 128
ROW_TILE_TARGET = 512            # ~85% of HBM roofline vs ~63% at 256
VMEM_TILE_BUDGET = 48 << 20      # conservative: fits v7x (64 MiB) and v5e/v6e


def _round_up(v, m):
    return (v + m - 1) // m * m


# --------------------------------------------------------------------------
# Kernels
# --------------------------------------------------------------------------
def _x_stats_kernel(x_ref, stats_ref):
    """Phase 1: per-tile partial [sum; sum_sq] of x (BN1 batch stats).
    Zero-padded rows/columns contribute exactly 0, so no masking needed here."""
    x = x_ref[...]
    stats_ref[0] = jnp.concatenate(
        [jnp.sum(x, axis=0, keepdims=True),
         jnp.sum(x * x, axis=0, keepdims=True)], axis=0)   # one combined store


def _make_phase2_kernel(n_real, tn, mask_rows):
    """Phase 2: h = Linear1(ReLU(BN1(x_tile))) stored as bf16; partial BN2 stats
    computed from the f32 h before the cast."""
    def kernel(bn1_ref, w1_ref, x_ref, h_ref, hstats_ref):
        # bn1_ref holds the pre-fused (scale, shift); finalization was hoisted
        # out of the per-tile loop into plain JAX.
        a = jnp.maximum(x_ref[...] * bn1_ref[0:1, :] + bn1_ref[1:2, :], 0.0)
        if mask_rows:
            # Zero contributions of zero-padded batch rows (keeps BN2 stats exact).
            row = (pl.program_id(0) * tn
                   + jax.lax.broadcasted_iota(jnp.int32, a.shape, 0))
            a = jnp.where(row < n_real, a, 0.0)
        # Linear1; bias b1 omitted on purpose: BN2 subtracts the batch mean right
        # after, so b1 cancels exactly in training mode (see pack_params docstring).
        h = jnp.dot(a.astype(jnp.bfloat16), w1_ref[...],
                    preferred_element_type=jnp.float32)     # bf16 MXU, f32 acc
        h_ref[...] = h.astype(h_ref.dtype)                   # bf16 writeback
        hstats_ref[0] = jnp.concatenate(
            [jnp.sum(h, axis=0, keepdims=True),
             jnp.sum(h * h, axis=0, keepdims=True)], axis=0)
    return kernel


def _phase3_kernel(bn2_ref, b2_ref, w2_ref, h_ref, x_ref, o_ref):
    """Phase 3: out = Linear2(ReLU(BN2(h_tile))) + b2 + x_tile (residual)."""
    a = jnp.maximum(h_ref[...].astype(jnp.float32) * bn2_ref[0:1, :]
                    + bn2_ref[1:2, :], 0.0)
    out = jnp.dot(a.astype(jnp.bfloat16), w2_ref[...],
                  preferred_element_type=jnp.float32)
    o_ref[...] = out + b2_ref[...] + x_ref[...]


# --------------------------------------------------------------------------
# Wrapper
# --------------------------------------------------------------------------
def _pick_n_tile(n, worst_row_bytes, resident_bytes):
    """Largest row tile (<= ROW_TILE_TARGET) whose double-buffered tiles plus the
    resident bf16 weights fit the VMEM budget.  Multiples of 16 (bf16 sublane
    tiling); a single full-height tile is used for small N (full-dim blocks have
    no divisibility constraint)."""
    avail = max(VMEM_TILE_BUDGET - 2 * resident_bytes, 1 << 20)
    if n <= ROW_TILE_TARGET:
        tn = _round_up(n, 8)
        if 2 * tn * worst_row_bytes <= avail or tn <= 16:
            return tn
    tn = max(16, min(ROW_TILE_TARGET, _round_up(n, 16)) // 16 * 16)
    while tn > 16 and 2 * tn * worst_row_bytes > avail:
        tn = max(16, (tn // 2) // 16 * 16)
    return tn


def pack_params(params, lane=LANE):
    """One-time packing (init-time, NOT per forward call):
       * zero-pad feature dims to multiples of 128 (lane-dense stores, full MXU
         tiles); padded gammas/betas/bias are 0 so padded columns are exactly 0,
       * pre-transpose + bf16-cast the Linear weights,
       * drop b1 entirely: BN2 subtracts its batch mean immediately after
         Linear1, so b1 cancels EXACTLY -- valid ONLY for training-mode
         (batch-statistics) BN; do not reuse for eval/running-stats mode."""
    hid, in_f = params["w1"].shape
    in_fp, hid_p = _round_up(in_f, lane), _round_up(hid, lane)

    def pad_vec(v, size):
        v = jnp.asarray(v, jnp.float32)
        return jnp.pad(v, (0, size - v.shape[0]))

    w1t = jnp.pad(jnp.asarray(params["w1"], jnp.float32).T,
                  ((0, in_fp - in_f), (0, hid_p - hid))).astype(jnp.bfloat16)
    w2t = jnp.pad(jnp.asarray(params["w2"], jnp.float32).T,
                  ((0, hid_p - hid), (0, in_fp - in_f))).astype(jnp.bfloat16)
    return {
        "gamma1": pad_vec(params["bn1_gamma"], in_fp),
        "beta1":  pad_vec(params["bn1_beta"], in_fp),
        "gamma2": pad_vec(params["bn2_gamma"], hid_p),
        "beta2":  pad_vec(params["bn2_beta"], hid_p),
        "b2":     pad_vec(params["b2"], in_fp).reshape(1, in_fp),
        "w1t":    w1t,   # (in_fp, hid_p) bf16
        "w2t":    w2t,   # (hid_p, in_fp) bf16
    }


@jax.jit
def resblock_forward(x, packed):
    """x: (N, input_size) float32.  packed: output of pack_params."""
    x = x.astype(jnp.float32)
    n, in_f = x.shape
    in_fp, hid_p = packed["w1t"].shape
    assert packed["w2t"].shape == (hid_p, in_fp) and in_f <= in_fp

    # --- row tiling / VMEM budgeting (all static, at trace time) -----------
    w_bytes = in_fp * hid_p * 2                     # one bf16 weight slab
    worst_row_bytes = 8 * in_fp + 2 * hid_p         # phase 3: x+out (f32), h (bf16)
    tn = _pick_n_tile(n, worst_row_bytes, w_bytes)
    n_tiles = -(-n // tn)
    n_pad = n_tiles * tn
    pad_rows = n_pad != n
    pad_cols = in_fp != in_f

    vmem_limit = int(min(max(2 * tn * worst_row_bytes + 2 * w_bytes + (4 << 20),
                             32 << 20), 100 << 20))
    cparams = pltpu.CompilerParams(dimension_semantics=("parallel",),
                                   vmem_limit_bytes=vmem_limit)

    x_p = jnp.pad(x, ((0, n_pad - n), (0, in_fp - in_f))) \
        if (pad_rows or pad_cols) else x

    row_tile = lambda f: pl.BlockSpec((tn, f), lambda i: (i, 0))
    const2d = lambda shape: pl.BlockSpec(shape, lambda i: (0, 0))
    part_spec = lambda f: pl.BlockSpec((1, 2, f), lambda i: (i, 0, 0))

    # ---- Phase 1: partial BN1 batch statistics ----------------------------
    x_part = pl.pallas_call(
        _x_stats_kernel,
        out_shape=jax.ShapeDtypeStruct((n_tiles, 2, in_fp), jnp.float32),
        grid=(n_tiles,),
        in_specs=[row_tile(in_fp)],
        out_specs=part_spec(in_fp),
        compiler_params=cparams,
    )(x_p)

    inv_n = 1.0 / n                                   # real N, not padded
    s = jnp.sum(x_part, axis=0)
    mean1 = s[0] * inv_n
    var1 = jnp.maximum(s[1] * inv_n - mean1 * mean1, 0.0)
    scale1 = packed["gamma1"] * jax.lax.rsqrt(var1 + EPS)
    bn1 = jnp.stack([scale1, packed["beta1"] - mean1 * scale1], axis=0)

    # ---- Phase 2: h = Linear1(ReLU(BN1(x))) (bf16) + partial BN2 stats ----
    h, h_part = pl.pallas_call(
        _make_phase2_kernel(n, tn, pad_rows),
        out_shape=(jax.ShapeDtypeStruct((n_pad, hid_p), jnp.bfloat16),
                   jax.ShapeDtypeStruct((n_tiles, 2, hid_p), jnp.float32)),
        grid=(n_tiles,),
        in_specs=[const2d((2, in_fp)),       # fused BN1 scale/shift
                  const2d((in_fp, hid_p)),   # W1^T (bf16, grid-invariant)
                  row_tile(in_fp)],          # x tile
        out_specs=(row_tile(hid_p),          # h tile (bf16)
                   part_spec(hid_p)),        # partial BN2 stats
        compiler_params=cparams,
    )(bn1, packed["w1t"], x_p)

    s = jnp.sum(h_part, axis=0)
    mean2 = s[0] * inv_n
    var2 = jnp.maximum(s[1] * inv_n - mean2 * mean2, 0.0)
    scale2 = packed["gamma2"] * jax.lax.rsqrt(var2 + EPS)
    bn2 = jnp.stack([scale2, packed["beta2"] - mean2 * scale2], axis=0)

    # ---- Phase 3: out = Linear2(ReLU(BN2(h))) + b2 + x ---------------------
    out = pl.pallas_call(
        _phase3_kernel,
        out_shape=jax.ShapeDtypeStruct((n_pad, in_fp), jnp.float32),
        grid=(n_tiles,),
        in_specs=[const2d((2, hid_p)),       # fused BN2 scale/shift
                  const2d((1, in_fp)),       # Linear2 bias b2
                  const2d((hid_p, in_fp)),   # W2^T (bf16, grid-invariant)
                  row_tile(hid_p),           # h tile (bf16)
                  row_tile(in_fp)],          # x tile (residual, re-read)
        out_specs=row_tile(in_fp),
        compiler_params=cparams,
    )(bn2, packed["b2"], packed["w2t"], h, x_p)

    if pad_rows or pad_cols:
        out = out[:n, :in_f]
    return out


# --------------------------------------------------------------------------
# References
# --------------------------------------------------------------------------
def resblock_reference(x, params):
    """Exact f32 PyTorch-style training-mode forward."""
    def bn(v, gamma, beta):
        m = jnp.mean(v, axis=0, keepdims=True)
        var = jnp.mean((v - m) ** 2, axis=0, keepdims=True)   # biased var
        return (v - m) / jnp.sqrt(var + EPS) * gamma + beta
    h = jnp.maximum(bn(x, params["bn1_gamma"], params["bn1_beta"]), 0.0)
    h = h @ params["w1"].T + params["b1"]
    h = jnp.maximum(bn(h, params["bn2_gamma"], params["bn2_beta"]), 0.0)
    return h @ params["w2"].T + params["b2"] + x


def resblock_kernel_precision_ref(x, params):
    """Mirrors the kernel's numerics exactly: fused sum/sumsq batch stats, bf16
    MXU operands with f32 accumulation, bf16 h materialization, b1 dropped
    (exact under training-mode BN)."""
    inv_n = 1.0 / x.shape[0]

    def fused_bn(stat_src, apply_to, gamma, beta):
        mean = jnp.sum(stat_src, axis=0) * inv_n
        var = jnp.maximum(jnp.sum(stat_src * stat_src, axis=0) * inv_n
                          - mean * mean, 0.0)
        scale = gamma * jax.lax.rsqrt(var + EPS)
        return apply_to * scale + (beta - mean * scale)

    a1 = jnp.maximum(fused_bn(x, x, params["bn1_gamma"], params["bn1_beta"]), 0.0)
    h = jnp.dot(a1.astype(jnp.bfloat16), params["w1"].T.astype(jnp.bfloat16),
                preferred_element_type=jnp.float32)
    h_bf = h.astype(jnp.bfloat16).astype(jnp.float32)
    a2 = jnp.maximum(fused_bn(h, h_bf, params["bn2_gamma"], params["bn2_beta"]), 0.0)
    out = jnp.dot(a2.astype(jnp.bfloat16), params["w2"].T.astype(jnp.bfloat16),
                  preferred_element_type=jnp.float32)
    return out + params["b2"] + x


def init_params(key, input_size, hidden_size):
    """PyTorch-default init: BN gamma=1/beta=0, Linear U(-1/sqrt(fan_in), ...)."""
    k1, k2, k3, k4 = jax.random.split(key, 4)
    lim1 = 1.0 / jnp.sqrt(input_size)
    lim2 = 1.0 / jnp.sqrt(hidden_size)
    return {
        "bn1_gamma": jnp.ones((input_size,), jnp.float32),
        "bn1_beta": jnp.zeros((input_size,), jnp.float32),
        "w1": jax.random.uniform(k1, (hidden_size, input_size),
                                 jnp.float32, -lim1, lim1),
        "b1": jax.random.uniform(k2, (hidden_size,), jnp.float32, -lim1, lim1),
        "bn2_gamma": jnp.ones((hidden_size,), jnp.float32),
        "bn2_beta": jnp.zeros((hidden_size,), jnp.float32),
        "w2": jax.random.uniform(k3, (input_size, hidden_size),
                                 jnp.float32, -lim2, lim2),
        "b2": jax.random.uniform(k4, (input_size,), jnp.float32, -lim2, lim2),
    }


if __name__ == "__main__":
    batch, input_size, hidden_size = 8, 32, 64

    key = jax.random.PRNGKey(0)
    kx, kp = jax.random.split(key)
    x = jax.random.normal(kx, (batch, input_size), jnp.float32)
    params = init_params(kp, input_size, hidden_size)
    packed = pack_params(params)          # one-time pad / transpose / bf16 cast

    out = jax.block_until_ready(resblock_forward(x, packed))
    assert out.shape == (batch, input_size)

    # Tight check vs a reference matched to the kernel's precision choices
    # (bf16 MXU operands, bf16 h materialization, fused batch-stat BN).
    ref_k = resblock_kernel_precision_ref(x, params)
    err_k = float(jnp.max(jnp.abs(out - ref_k)))
    assert jnp.allclose(out, ref_k, atol=2e-3, rtol=2e-3), \
        f"mismatch vs precision-matched reference: max abs diff {err_k}"

    # Loose check vs exact-f32 PyTorch math (gap = bf16 rounding only).
    ref_f = resblock_reference(x, params)
    err_f = float(jnp.max(jnp.abs(out - ref_f)))
    assert jnp.allclose(out, ref_f, atol=5e-2, rtol=5e-2), \
        f"mismatch vs f32 reference: max abs diff {err_f}"

    # Awkward (non-tile-multiple) batch exercises the padded/masked row path.
    x2 = jax.random.normal(jax.random.PRNGKey(1), (13, input_size), jnp.float32)
    out2 = jax.block_until_ready(resblock_forward(x2, packed))
    assert out2.shape == (13, input_size)
    ref2 = resblock_kernel_precision_ref(x2, params)
    err2 = float(jnp.max(jnp.abs(out2 - ref2)))
    assert jnp.allclose(out2, ref2, atol=2e-3, rtol=2e-3), \
        f"ragged-batch mismatch: max abs diff {err2}"

    print("KERNEL_OK")
</pallas_src>

<mosaic_0001>
module attributes {stable_mosaic.version = 11 : i64} {
  func.func @_x_stats_kernel(%arg0: i32, %arg1: memref<8x128xf32, #tpu.memory_space<vmem>>, %arg2: memref<1x2x128xf32, #tpu.memory_space<vmem>>) attributes {dimension_semantics = [#tpu.dimension_semantics<parallel>], iteration_bounds = array<i64: 1>, scalar_prefetch = 0 : i64, scratch_operands = 0 : i64, tpu.core_type = #tpu.core_type<tc>, window_params = [{transform_indices = @transform_0, window_bounds = array<i64: 8, 128>}, {transform_indices = @transform_1, window_bounds = array<i64: 1, 2, 128>}]} {
    %c0 = arith.constant 0 : index
    %c0_0 = arith.constant 0 : index
    %0 = vector.load %arg1[%c0, %c0_0] : memref<8x128xf32, #tpu.memory_space<vmem>>, vector<8x128xf32>
    %cst = arith.constant dense<0.000000e+00> : vector<128xf32>
    %1 = vector.multi_reduction <add>, %0, %cst [0] : vector<8x128xf32> to vector<128xf32>
    %2 = vector.shape_cast %1 : vector<128xf32> to vector<1x128xf32>
    %3 = arith.mulf %0, %0 : vector<8x128xf32>
    %cst_1 = arith.constant dense<0.000000e+00> : vector<128xf32>
    %4 = vector.multi_reduction <add>, %3, %cst_1 [0] : vector<8x128xf32> to vector<128xf32>
    %5 = vector.shape_cast %4 : vector<128xf32> to vector<1x128xf32>
    %6 = tpu.concatenate %2, %5 in 0 : vector<1x128xf32>, vector<1x128xf32> -> vector<2x128xf32>
    %c0_2 = arith.constant 0 : index
    %c0_3 = arith.constant 0 : index
    %c0_4 = arith.constant 0 : index
    %7 = vector.load %arg2[%c0_2, %c0_3, %c0_4] : memref<1x2x128xf32, #tpu.memory_space<vmem>>, vector<1x2x128xf32>
    %8 = vector.shape_cast %7 : vector<1x2x128xf32> to vector<2x128xf32>
    %9 = vector.shape_cast %6 : vector<2x128xf32> to vector<1x2x128xf32>
    tpu.vector_store %arg2[%c0_2, %c0_3, %c0_4], %9 {strides = array<i32>} : memref<1x2x128xf32, #tpu.memory_space<vmem>>, vector<1x2x128xf32>,
    return
  }
  func.func @transform_0(%arg0: i32) -> (i32, i32) {
    %c0_i32 = arith.constant 0 : i32
    %c0_i32_0 = arith.constant 0 : i32
    return %arg0, %c0_i32 : i32, i32
  }
  func.func @transform_1(%arg0: i32) -> (i32, i32, i32) {
    %c0_i32 = arith.constant 0 : i32
    %c0_i32_0 = arith.constant 0 : i32
    %c0_i32_1 = arith.constant 0 : i32
    return %arg0, %c0_i32, %c0_i32_0 : i32, i32, i32
  }
}

module attributes {stable_mosaic.version = 11 : i64} {
  func.func @kernel(%arg0: i32, %arg1: memref<2x128xf32, #tpu.memory_space<vmem>>, %arg2: memref<128x128xbf16, #tpu.memory_space<vmem>>, %arg3: memref<8x128xf32, #tpu.memory_space<vmem>>, %arg4: memref<8x128xbf16, #tpu.memory_space<vmem>>, %arg5: memref<1x2x128xf32, #tpu.memory_space<vmem>>) attributes {dimension_semantics = [#tpu.dimension_semantics<parallel>], iteration_bounds = array<i64: 1>, scalar_prefetch = 0 : i64, scratch_operands = 0 : i64, tpu.core_type = #tpu.core_type<tc>, window_params = [{pipeline_mode = #tpu.pipeline_mode<synchronous>, transform_indices = @transform_0, window_bounds = array<i64: 2, 128>}, {pipeline_mode = #tpu.pipeline_mode<synchronous>, transform_indices = @transform_1, window_bounds = array<i64: 128, 128>}, {transform_indices = @transform_2, window_bounds = array<i64: 8, 128>}, {transform_indices = @transform_3, window_bounds = array<i64: 8, 128>}, {transform_indices = @transform_4, window_bounds = array<i64: 1, 2, 128>}]} {
    %c0 = arith.constant 0 : index
    %c0_0 = arith.constant 0 : index
    %0 = vector.load %arg3[%c0, %c0_0] : memref<8x128xf32, #tpu.memory_space<vmem>>, vector<8x128xf32>
    %c0_1 = arith.constant 0 : index
    %c0_2 = arith.constant 0 : index
    %1 = vector.load %arg1[%c0_1, %c0_2] : memref<2x128xf32, #tpu.memory_space<vmem>>, vector<1x128xf32>
    %2 = vector.broadcast %1 : vector<1x128xf32> to vector<8x128xf32>
    %3 = arith.mulf %0, %2 : vector<8x128xf32>
    %c1 = arith.constant 1 : index
    %c0_3 = arith.constant 0 : index
    %4 = vector.load %arg1[%c1, %c0_3] : memref<2x128xf32, #tpu.memory_space<vmem>>, vector<1x128xf32>
    %5 = vector.broadcast %4 : vector<1x128xf32> to vector<8x128xf32>
    %6 = arith.addf %3, %5 : vector<8x128xf32>
    %cst = arith.constant 0.000000e+00 : f32
    %7 = vector.broadcast %cst : f32 to vector<8x128xf32>
    %8 = arith.maximumf %6, %7 : vector<8x128xf32>
    %9 = arith.truncf %8 : vector<8x128xf32> to vector<8x128xbf16>
    %c0_4 = arith.constant 0 : index
    %c0_5 = arith.constant 0 : index
    %10 = vector.load %arg2[%c0_4, %c0_5] : memref<128x128xbf16, #tpu.memory_space<vmem>>, vector<128x128xbf16>
    %cst_6 = arith.constant dense<0.000000e+00> : vector<8x128xf32>
    %11 = tpu.matmul %9, %10, %cst_6 {dimension_numbers = #tpu.dot_dimension_numbers<[1], [0], [0], [1], [0, 0, 1, 1], [], []>} : vector<8x128xbf16>, vector<128x128xbf16>, vector<8x128xf32> -> vector<8x128xf32>
    %12 = arith.truncf %11 : vector<8x128xf32> to vector<8x128xbf16>
    %c0_7 = arith.constant 0 : index
    %c0_8 = arith.constant 0 : index
    %13 = vector.load %arg4[%c0_7, %c0_8] : memref<8x128xbf16, #tpu.memory_space<vmem>>, vector<8x128xbf16>
    tpu.vector_store %arg4[%c0_7, %c0_8], %12 {strides = array<i32>} : memref<8x128xbf16, #tpu.memory_space<vmem>>, vector<8x128xbf16>,
    %cst_9 = arith.constant dense<0.000000e+00> : vector<128xf32>
    %14 = vector.multi_reduction <add>, %11, %cst_9 [0] : vector<8x128xf32> to vector<128xf32>
    %15 = vector.shape_cast %14 : vector<128xf32> to vector<1x128xf32>
    %16 = arith.mulf %11, %11 : vector<8x128xf32>
    %cst_10 = arith.constant dense<0.000000e+00> : vector<128xf32>
    %17 = vector.multi_reduction <add>, %16, %cst_10 [0] : vector<8x128xf32> to vector<128xf32>
    %18 = vector.shape_cast %17 : vector<128xf32> to vector<1x128xf32>
    %19 = tpu.concatenate %15, %18 in 0 : vector<1x128xf32>, vector<1x128xf32> -> vector<2x128xf32>
    %c0_11 = arith.constant 0 : index
    %c0_12 = arith.constant 0 : index
    %c0_13 = arith.constant 0 : index
    %20 = vector.load %arg5[%c0_11, %c0_12, %c0_13] : memref<1x2x128xf32, #tpu.memory_space<vmem>>, vector<1x2x128xf32>
    %21 = vector.shape_cast %20 : vector<1x2x128xf32> to vector<2x128xf32>
    %22 = vector.shape_cast %19 : vector<2x128xf32> to vector<1x2x128xf32>
    tpu.vector_store %arg5[%c0_11, %c0_12, %c0_13], %22 {strides = array<i32>} : memref<1x2x128xf32, #tpu.memory_space<vmem>>, vector<1x2x128xf32>,
    return
  }
  func.func @transform_0(%arg0: i32) -> (i32, i32) {
    %c0_i32 = arith.constant 0 : i32
    %c0_i32_0 = arith.constant 0 : i32
    %c0_i32_1 = arith.constant 0 : i32
    return %c0_i32, %c0_i32_0 : i32, i32
  }
  func.func @transform_1(%arg0: i32) -> (i32, i32) {
    %c0_i32 = arith.constant 0 : i32
    %c0_i32_0 = arith.constant 0 : i32
    %c0_i32_1 = arith.constant 0 : i32
    return %c0_i32, %c0_i32_0 : i32, i32
  }
  func.func @transform_2(%arg0: i32) -> (i32, i32) {
    %c0_i32 = arith.constant 0 : i32
    %c0_i32_0 = arith.constant 0 : i32
    return %arg0, %c0_i32 : i32, i32
  }
  func.func @transform_3(%arg0: i32) -> (i32, i32) {
    %c0_i32 = arith.constant 0 : i32
    %c0_i32_0 = arith.constant 0 : i32
    return %arg0, %c0_i32 : i32, i32
  }
  func.func @transform_4(%arg0: i32) -> (i32, i32, i32) {
    %c0_i32 = arith.constant 0 : i32
    %c0_i32_0 = arith.constant 0 : i32
    %c0_i32_1 = arith.constant 0 : i32
    return %arg0, %c0_i32, %c0_i32_0 : i32, i32, i32
  }
}

module attributes {stable_mosaic.version = 11 : i64} {
  func.func @_phase3_kernel(%arg0: i32, %arg1: memref<2x128xf32, #tpu.memory_space<vmem>>, %arg2: memref<1x128xf32, #tpu.memory_space<vmem>>, %arg3: memref<128x128xbf16, #tpu.memory_space<vmem>>, %arg4: memref<8x128xbf16, #tpu.memory_space<vmem>>, %arg5: memref<8x128xf32, #tpu.memory_space<vmem>>, %arg6: memref<8x128xf32, #tpu.memory_space<vmem>>) attributes {dimension_semantics = [#tpu.dimension_semantics<parallel>], iteration_bounds = array<i64: 1>, scalar_prefetch = 0 : i64, scratch_operands = 0 : i64, tpu.core_type = #tpu.core_type<tc>, window_params = [{pipeline_mode = #tpu.pipeline_mode<synchronous>, transform_indices = @transform_0, window_bounds = array<i64: 2, 128>}, {pipeline_mode = #tpu.pipeline_mode<synchronous>, transform_indices = @transform_1, window_bounds = array<i64: 1, 128>}, {pipeline_mode = #tpu.pipeline_mode<synchronous>, transform_indices = @transform_2, window_bounds = array<i64: 128, 128>}, {transform_indices = @transform_3, window_bounds = array<i64: 8, 128>}, {transform_indices = @transform_4, window_bounds = array<i64: 8, 128>}, {transform_indices = @transform_5, window_bounds = array<i64: 8, 128>}]} {
    %c0 = arith.constant 0 : index
    %c0_0 = arith.constant 0 : index
    %0 = vector.load %arg4[%c0, %c0_0] : memref<8x128xbf16, #tpu.memory_space<vmem>>, vector<8x128xbf16>
    %1 = arith.extf %0 : vector<8x128xbf16> to vector<8x128xf32>
    %c0_1 = arith.constant 0 : index
    %c0_2 = arith.constant 0 : index
    %2 = vector.load %arg1[%c0_1, %c0_2] : memref<2x128xf32, #tpu.memory_space<vmem>>, vector<1x128xf32>
    %3 = vector.broadcast %2 : vector<1x128xf32> to vector<8x128xf32>
    %4 = arith.mulf %1, %3 : vector<8x128xf32>
    %c1 = arith.constant 1 : index
    %c0_3 = arith.constant 0 : index
    %5 = vector.load %arg1[%c1, %c0_3] : memref<2x128xf32, #tpu.memory_space<vmem>>, vector<1x128xf32>
    %6 = vector.broadcast %5 : vector<1x128xf32> to vector<8x128xf32>
    %7 = arith.addf %4, %6 : vector<8x128xf32>
    %cst = arith.constant 0.000000e+00 : f32
    %8 = vector.broadcast %cst : f32 to vector<8x128xf32>
    %9 = arith.maximumf %7, %8 : vector<8x128xf32>
    %10 = arith.truncf %9 : vector<8x128xf32> to vector<8x128xbf16>
    %c0_4 = arith.constant 0 : index
    %c0_5 = arith.constant 0 : index
    %11 = vector.load %arg3[%c0_4, %c0_5] : memref<128x128xbf16, #tpu.memory_space<vmem>>, vector<128x128xbf16>
    %cst_6 = arith.constant dense<0.000000e+00> : vector<8x128xf32>
    %12 = tpu.matmul %10, %11, %cst_6 {dimension_numbers = #tpu.dot_dimension_numbers<[1], [0], [0], [1], [0, 0, 1, 1], [], []>} : vector<8x128xbf16>, vector<128x128xbf16>, vector<8x128xf32> -> vector<8x128xf32>
    %c0_7 = arith.constant 0 : index
    %c0_8 = arith.constant 0 : index
    %13 = vector.load %arg2[%c0_7, %c0_8] : memref<1x128xf32, #tpu.memory_space<vmem>>, vector<1x128xf32>
    %14 = vector.broadcast %13 : vector<1x128xf32> to vector<8x128xf32>
    %15 = arith.addf %12, %14 : vector<8x128xf32>
    %c0_9 = arith.constant 0 : index
    %c0_10 = arith.constant 0 : index
    %16 = vector.load %arg5[%c0_9, %c0_10] : memref<8x128xf32, #tpu.memory_space<vmem>>, vector<8x128xf32>
    %17 = arith.addf %15, %16 : vector<8x128xf32>
    %c0_11 = arith.constant 0 : index
    %c0_12 = arith.constant 0 : index
    %18 = vector.load %arg6[%c0_11, %c0_12] : memref<8x128xf32, #tpu.memory_space<vmem>>, vector<8x128xf32>
    tpu.vector_store %arg6[%c0_11, %c0_12], %17 {strides = array<i32>} : memref<8x128xf32, #tpu.memory_space<vmem>>, vector<8x128xf32>,
    return
  }
  func.func @transform_0(%arg0: i32) -> (i32, i32) {
    %c0_i32 = arith.constant 0 : i32
    %c0_i32_0 = arith.constant 0 : i32
    %c0_i32_1 = arith.constant 0 : i32
    return %c0_i32, %c0_i32_0 : i32, i32
  }
  func.func @transform_1(%arg0: i32) -> (i32, i32) {
    %c0_i32 = arith.constant 0 : i32
    %c0_i32_0 = arith.constant 0 : i32
    %c0_i32_1 = arith.constant 0 : i32
    return %c0_i32, %c0_i32_0 : i32, i32
  }
  func.func @transform_2(%arg0: i32) -> (i32, i32) {
    %c0_i32 = arith.constant 0 : i32
    %c0_i32_0 = arith.constant 0 : i32
    %c0_i32_1 = arith.constant 0 : i32
    return %c0_i32, %c0_i32_0 : i32, i32
  }
  func.func @transform_3(%arg0: i32) -> (i32, i32) {
    %c0_i32 = arith.constant 0 : i32
    %c0_i32_0 = arith.constant 0 : i32
    return %arg0, %c0_i32 : i32, i32
  }
  func.func @transform_4(%arg0: i32) -> (i32, i32) {
    %c0_i32 = arith.constant 0 : i32
    %c0_i32_0 = arith.constant 0 : i32
    return %arg0, %c0_i32 : i32, i32
  }
  func.func @transform_5(%arg0: i32) -> (i32, i32) {
    %c0_i32 = arith.constant 0 : i32
    %c0_i32_0 = arith.constant 0 : i32
    return %arg0, %c0_i32 : i32, i32
  }
}

</mosaic_0001>

<bundles_post_ra>
// kernel: resblock_forward.3
= control target key start
LH: loop header
LB: loop body
LE: loop exit
PB: predicated region body
PF: predicated region fallthrough
CT: control target
= control target key end

     0   :  { %vm22_vm0 = vcmask 1040384   ;;  %s45_s0 = inlined_call_operand.vmem [shape: f32[8,128], index: 0, kind: input, shape index: {}]   ;;  %s46_s1 = inlined_call_operand.vmem [shape: f32[1,2,128], index: 1, kind: output, shape index: {}]  }
   0x1   :  { %v8_v0 = vld [vmem:[%s45_s0] sm:$0xff] }
   0x2   :  { %v9_v1 = vrot.slane %v8_v0, 4  ;;  %v15_v2 = vmul.f32 %v8_v0, %v8_v0 }
   0x4   :  { %v10_v3 = vadd.f32 %v9_v1, %v8_v0  ;;  %v16_v4 = vrot.slane %v15_v2, 4 }
   0x6   :  { %v11_v5 = vrot.slane %v10_v3, 2  ;;  %v17_v6 = vadd.f32 %v16_v4, %v15_v2 }
   0x8   :  { %v12_v7 = vadd.f32 %v11_v5, %v10_v3  ;;  %v18_v8 = vrot.slane %v17_v6, 2 }
   0xa   :  { %v13_v9 = vrot.slane %v12_v7, 1  ;;  %v19_v10 = vadd.f32 %v18_v8, %v17_v6 }
   0xc   :  { %v14_v11 = vadd.f32 %v13_v9, %v12_v7  ;;  %v20_v12 = vrot.slane %v19_v10, 1 }
   0xe   :  { %v21_v13 = vadd.f32 %v20_v12, %v19_v10 }
  0x10   :  { %v23_v14 = vsel %vm22_vm0, %v14_v11, %v21_v13 }
  0x11   :  { %24 = vst [vmem:[%s46_s1] sm:$0x3] %v23_v14 }

// kernel: resblock_forward.4
= control target key start
LH: loop header
LB: loop body
LE: loop exit
PB: predicated region body
PF: predicated region fallthrough
CT: control target
= control target key end

     0   :  { %v211_v0 = vmov 0.0   ;;  %vm212_vm0 = vmmov 0   ;;  %vm151_vm1 = vcmask 1040384   ;;  %s277_s1 = inlined_call_operand.vmem [shape: bf16[128,128], index: 1, kind: input, shape index: {}]   ;;  %s278_s0 = inlined_call_operand.vmem [shape: f32[2,128], index: 0, kind: input, shape index: {}]   ;;  %s279_s2 = inlined_call_operand.vmem [shape: f32[8,128], index: 2, kind: input, shape index: {}]   ;;  %s280_s3 = inlined_call_operand.vmem [shape: bf16[8,128], index: 3, kind: output, shape index: {0}]   ;;  %s281_s4 = inlined_call_operand.vmem [shape: f32[1,2,128], index: 4, kind: output, shape index: {1}]  }
   0x1   :  { %181 = vmatprep.subr.bf16.mxu0 %v211_v0  ;;  %v203_v1 = vld [vmem:[%s277_s1] sm:$0xff]   ;;  %197 = vmatprep.mubr.msk.bf16.mxu0 %vm212_vm0, %v211_v0  ;;  %v204_v2 = vld [vmem:[%s277_s1 + $0x8] sm:$0xff]   ;;  %v205_v3 = vld [vmem:[%s277_s1 + $0x10] sm:$0xff]  }
   0x2   :  { %182 = vmatpush3.bf16.msra.mxu0 %v203_v1  ;;  %v206_v4 = vld [vmem:[%s277_s1 + $0x18] sm:$0xff]   ;;  %v207_v5 = vld [vmem:[%s277_s1 + $0x20] sm:$0xff]   ;;  %v208_v9 = vld [vmem:[%s277_s1 + $0x28] sm:$0xff]  }
   0x3   :  { %183 = vmatprep.subr.bf16.mxu0 %v211_v0  ;;  %v17_v6 = vld [vmem:[%s279_s2] sm:$0xff]  ;;  %v209_v12 = vld [vmem:[%s277_s1 + $0x30] sm:$0xff]   ;;  %v210_v14 = vld [vmem:[%s277_s1 + $0x38] sm:$0xff]  }
   0x4   :  { %v162_v7 = vld [vmem:[%s278_s0] ss:$0 sm:$0xff]  ;;  %v163_v10 = vld [vmem:[%s278_s0 + $0x1] ss:$0 sm:$0xff] }
   0x5   :  { %v23_v8 = vmul.f32 %v162_v7, %v17_v6 }
   0x6   :  { %184 = vmatpush3.bf16.msra.mxu0 %v204_v2 }
   0x7   :  { %185 = vmatprep.subr.bf16.mxu0 %v211_v0  ;;  %v29_v11 = vadd.f32 %v163_v10, %v23_v8 }
   0x9   :  { %v30_v13 = vmax.f32 %v29_v11, 0.0 }
   0xa   :  { %186 = vmatpush3.bf16.msra.mxu0 %v205_v3 }
   0xb   :  { %187 = vmatprep.subr.bf16.mxu0 %v211_v0  ;;  %v31_v15 = vpack.c.bf16 %v30_v13, %v30_v13 }
   0xe   :  { %188 = vmatpush3.bf16.msra.mxu0 %v206_v4 }
   0xf   :  { %189 = vmatprep.subr.bf16.mxu0 %v211_v0 }
  0x12   :  { %190 = vmatpush3.bf16.msra.mxu0 %v207_v5 }
  0x13   :  { %191 = vmatprep.subr.bf16.mxu0 %v211_v0 }
  0x16   :  { %192 = vmatpush3.bf16.msra.mxu0 %v208_v9 }
  0x17   :  { %193 = vmatprep.subr.bf16.mxu0 %v211_v0 }
  0x1a   :  { %194 = vmatpush3.bf16.msra.mxu0 %v209_v12 }
  0x1b   :  { %195 = vmatprep.subr.bf16.mxu0 %v211_v0 }
  0x1e   :  { %196 = vmatpush3.bf16.msra.mxu0 %v210_v14 }
  0x21   :  { %198 = vmatmul.mubr.bf16.vlgmr.msra.gmra.mrb[0].mxu0 %v31_v15 }
  0xf4   :  { %v130_v16 = vpop.f32.mrb[0].mxu0 }
  0xf5   :  { %v136_v17 = vpack.c.bf16 %v130_v16, %v130_v16  ;;  %v138_v18 = vrot.slane %v130_v16, 4  ;;  %v144_v19 = vmul.f32 %v130_v16, %v130_v16  ;;  %v199_v20 = vpop.f32.mrb[1].mxu0 }
  0xf6   :  { %v133_v21 = vpop.f32.mrb[2].mxu0 }
  0xf7   :  { %137 = vst [vmem:[%s280_s3] sm:$0xf] %v136_v17  ;;  %v139_v22 = vadd.f32 %v138_v18, %v130_v16  ;;  %v145_v23 = vrot.slane %v144_v19, 4  ;;  %v200_v24 = vpop.f32.mrb[3].mxu0 }
  0xf9   :  { %v140_v25 = vrot.slane %v139_v22, 2  ;;  %v146_v26 = vadd.f32 %v145_v23, %v144_v19 }
  0xfb   :  { %v141_v27 = vadd.f32 %v140_v25, %v139_v22  ;;  %v147_v28 = vrot.slane %v146_v26, 2 }
  0xfd   :  { %v142_v29 = vrot.slane %v141_v27, 1  ;;  %v148_v30 = vadd.f32 %v147_v28, %v146_v26 }
  0xff   :  { %v149_v31 = vrot.slane %v148_v30, 1  ;;  %v143_v32 = vadd.f32 %v142_v29, %v141_v27 }
 0x101   :  { %v150_v33 = vadd.f32 %v149_v31, %v148_v30 }
 0x103   :  { %v152_v34 = vsel %vm151_vm1, %v143_v32, %v150_v33 }
 0x104   :  { %153 = vst [vmem:[%s281_s4] sm:$0x3] %v152_v34 }

// kernel: resblock_forward.5
= control target key start
LH: loop header
LB: loop body
LE: loop exit
PB: predicated region body
PF: predicated region fallthrough
CT: control target
= control target key end

     0   :  { %v241_v1 = vmov 0.0   ;;  %vm242_vm0 = vmmov 0   ;;  %s325_s0 = inlined_call_operand.vmem [shape: f32[2,128], index: 0, kind: input, shape index: {}]   ;;  %s326_s1 = inlined_call_operand.vmem [shape: f32[1,128], index: 1, kind: input, shape index: {}]   ;;  %s327_s2 = inlined_call_operand.vmem [shape: bf16[128,128], index: 2, kind: input, shape index: {}]   ;;  %s328_s3 = inlined_call_operand.vmem [shape: bf16[8,128], index: 3, kind: input, shape index: {}]   ;;  %s329_s4 = inlined_call_operand.vmem [shape: f32[8,128], index: 4, kind: input, shape index: {}]   ;;  %s330_s5 = inlined_call_operand.hbm [shape: f32[8,128], index: 5, kind: output, shape index: {}]  }
   0x1   :  { %v209_v0 = vld [vmem:[%s327_s2] sm:$0xff]   ;;  %186 = vmatprep.subr.bf16.mxu0 %v241_v1  ;;  %v210_v2 = vld [vmem:[%s327_s2 + $0x8] sm:$0xff]   ;;  %202 = vmatprep.mubr.msk.bf16.mxu0 %vm242_vm0, %v241_v1  ;;  %v211_v3 = vld [vmem:[%s327_s2 + $0x10] sm:$0xff]  }
   0x2   :  { %187 = vmatpush3.bf16.msra.mxu0 %v209_v0 }
   0x3   :  { %188 = vmatprep.subr.bf16.mxu0 %v241_v1 }
   0x6   :  { %189 = vmatpush3.bf16.msra.mxu0 %v210_v2 }
   0x7   :  { %190 = vmatprep.subr.bf16.mxu0 %v241_v1 }
   0x8   :  { %10 = vsyncpa [#allocation3], 0  ;;  %v212_v4 = vld [vmem:[%s327_s2 + $0x18] sm:$0xff]   ;;  %v22_v5 = vld [vmem:[%s328_s3] sm:$0xf]  ;;  %s243_s17 = smov [#allocation2]  }
   0x9   :  { %v23_v6 = vunpack.c.l.bf16 %v22_v5  ;;  %v213_v7 = vld [vmem:[%s327_s2 + $0x20] sm:$0xff]   ;;  %v214_v10 = vld [vmem:[%s327_s2 + $0x28] sm:$0xff]   ;;  %v215_v13 = vld [vmem:[%s327_s2 + $0x30] sm:$0xff]   ;;  %s158_s18 = sshll.u32 %s243_s17, 4  ;;  %s159_s18 = int_to_ptr.vmem [resolvable:$true] %s158_s18 }
   0xa   :  { %191 = vmatpush3.bf16.msra.mxu0 %v211_v3  ;;  %v166_v8 = vld [vmem:[%s325_s0] ss:$0 sm:$0xff]  ;;  %v167_v11 = vld [vmem:[%s325_s0 + $0x1] ss:$0 sm:$0xff]  ;;  %v216_v15 = vld [vmem:[%s327_s2 + $0x38] sm:$0xff]   ;;  %s217_s2 = scalar_lea.vmem %s159_s18, 128  ;;  %p222_p1 = scmp.lt.s32.totalorder %s159_s18, %s159_s18 }
   0xb   :  { %192 = vmatprep.subr.bf16.mxu0 %v241_v1  ;;  %v29_v9 = vmul.f32 %v166_v8, %v23_v6  ;;  %v168_v17 = vld [vmem:[%s326_s1] ss:$0 sm:$0xff]  ;;  %p218_p0 = scmp.ne.s32.totalorder %s159_s18, %s217_s2  ;;  %p223_p2 = scmp.lt.s32.totalorder %s217_s2, %s217_s2 }
   0xc   :  { %v149_v19 = vld [vmem:[%s329_s4] sm:$0xff] }
   0xd   :  { %v35_v12 = vadd.f32 %v167_v11, %v29_v9  ;;  %p224_p3 = por %p223_p2, %p222_p1 }
   0xe   :  { %193 = vmatpush3.bf16.msra.mxu0 %v212_v4 }
   0xf   :  { %194 = vmatprep.subr.bf16.mxu0 %v241_v1  ;;  %v36_v14 = vmax.f32 %v35_v12, 0.0  ;;  %p225_p4 = pnand %p224_p3, %p218_p0 }
  0x11   :  { %v37_v16 = vpack.c.bf16 %v36_v14, %v36_v14 }
  0x12   :  { %195 = vmatpush3.bf16.msra.mxu0 %v213_v7 }
  0x13   :  { %196 = vmatprep.subr.bf16.mxu0 %v241_v1 }
  0x16   :  { %197 = vmatpush3.bf16.msra.mxu0 %v214_v10 }
  0x17   :  { %198 = vmatprep.subr.bf16.mxu0 %v241_v1 }
  0x1a   :  { %199 = vmatpush3.bf16.msra.mxu0 %v215_v13 }
  0x1b   :  { %200 = vmatprep.subr.bf16.mxu0 %v241_v1 }
  0x1e   :  { %201 = vmatpush3.bf16.msra.mxu0 %v216_v15 }
  0x21   :  { %203 = vmatmul.mubr.bf16.vlgmr.msra.gmra.mrb[0].mxu0 %v37_v16 }
  0xf4   :  { %v143_v18 = vpop.f32.mrb[0].mxu0 }
  0xf5   :  { %v144_v20 = vadd.f32 %v168_v17, %v143_v18  ;;  %v204_v21 = vpop.f32.mrb[1].mxu0 }
  0xf6   :  { %v146_v22 = vpop.f32.mrb[2].mxu0 }
  0xf7   :  { %v205_v23 = vpop.f32.mrb[3].mxu0  ;;  %v150_v24 = vadd.f32 %v149_v19, %v144_v20 }
  0xf9   :  { %151 = vst [vmem:[#allocation2] sm:$0xff] %v150_v24 }
  0xfa   :  { %228 = shalt.err (!%p225_p4)
}
  0xfb   :  { %s229_s4 = scalar_lea.hbm %s330_s5, 128 }
  0xfc   :  { %p230_p5 = scmp.ne.s32.totalorder %s330_s5, %s229_s4  ;;  %p233_p6 = scmp.lt.u32.totalorder %s229_s4, %s330_s5 }
  0xfe   :  { %p235_p7 = pnand %p233_p6, %p230_p5 }
 0x100   :  { %238 = shalt.err (!%p235_p7)
}
 0x101   :  { %161 = dma.vmem_to_hbm [thread:$0]  %s159_s18, 128, %s330_s5, [#allocation3]  }
 0x102   :  { %239 = dma.done.wait [#allocation3], 128  }
 0x103   :  { %240 = vsyncadd [#allocation3], 4294967168 }
 0x104   :  { %165 = vsyncpa [#allocation3], 1 }

</bundles_post_ra>
